<compile_context>
chip_gen: v6e
topology: v6e:2x2x1
jax: 0.10.0
libtpu: 0.0.40
codegen_flags: <defaults>
</compile_context>

<pallas_src>
import jax
import jax.numpy as jnp
from jax.experimental import pallas as pl
from jax.experimental.pallas import tpu as pltpu


def _round_up(x: int, m: int) -> int:
    return ((x + m - 1) // m) * m


def conv1x1_sigmoid_kernel(x_ref, w_ref, b_ref, o_ref):
    """One (batch, spatial-tile) block of the pointwise conv + sigmoid.

    x_ref: (1, Cin, Thw)   VMEM
    w_ref: (Cout, Cin)     VMEM (resident across grid)
    b_ref: (Cout, 1)       VMEM (resident across grid)
    o_ref: (1, Cout, Thw)  VMEM
    """
    x = x_ref[0]                                   # (Cin, Thw)
    w = w_ref[...].astype(x.dtype)                 # (Cout, Cin)
    # MXU matmul with f32 accumulation.
    y = jnp.dot(w, x, preferred_element_type=jnp.float32)   # (Cout, Thw)
    y = y + b_ref[...].astype(jnp.float32)         # bias broadcasts over lanes
    o_ref[0] = jax.nn.sigmoid(y).astype(o_ref.dtype)


def output_conv_forward(x, weight, bias, *, tile_hw: int = 512):
    """x: (N, Cin, H, W). weight: (Cout, Cin, 1, 1). bias: (Cout,).

    Returns sigmoid(conv1x1(x)) with shape (N, Cout, H, W), dtype of x.
    """
    N, Cin, H, W = x.shape
    Cout = weight.shape[0]
    hw = H * W

    # Lane-dense spatial tile: multiple of 128, capped at tile_hw.
    t = min(_round_up(tile_hw, 128), _round_up(hw, 128))
    hw_pad = _round_up(hw, t)

    xf = x.reshape(N, Cin, hw)
    if hw_pad != hw:
        xf = jnp.pad(xf, ((0, 0), (0, 0), (0, hw_pad - hw)))

    w2 = weight.reshape(Cout, Cin)
    b2 = bias.reshape(Cout, 1).astype(jnp.float32)

    elt = jnp.dtype(x.dtype).itemsize
    cost = pl.CostEstimate(
        flops=2 * N * Cout * Cin * hw_pad,
        transcendentals=N * Cout * hw_pad,                      # sigmoid exp
        bytes_accessed=(N * Cin * hw_pad + N * Cout * hw_pad) * elt
        + Cout * Cin * jnp.dtype(weight.dtype).itemsize
        + Cout * 4,
    )

    out = pl.pallas_call(
        conv1x1_sigmoid_kernel,
        out_shape=jax.ShapeDtypeStruct((N, Cout, hw_pad), x.dtype),
        grid=(N, hw_pad // t),
        in_specs=[
            pl.BlockSpec((1, Cin, t), lambda n, s: (n, 0, s)),
            pl.BlockSpec((Cout, Cin), lambda n, s: (0, 0)),
            pl.BlockSpec((Cout, 1), lambda n, s: (0, 0)),
        ],
        out_specs=pl.BlockSpec((1, Cout, t), lambda n, s: (n, 0, s)),
        compiler_params=pltpu.CompilerParams(
            dimension_semantics=("parallel", "parallel"),
            vmem_limit_bytes=32 * 1024 * 1024,
        ),
        cost_estimate=cost,
    )(xf, w2, b2)

    return out[:, :, :hw].reshape(N, Cout, H, W)


def output_conv_reference(x, weight, bias):
    """Pure-JAX reference mirroring nn.Conv2d(k=1) + Sigmoid."""
    w2 = weight.reshape(weight.shape[0], weight.shape[1])        # (Cout, Cin)
    y = jnp.einsum("oi,nihw->nohw", w2, x) + bias[None, :, None, None]
    return jax.nn.sigmoid(y)


if __name__ == "__main__":
    # Small shapes consistent with the module: batch=2, in_channels=4,
    # out_channels=3, spatial 16x16.
    N, Cin, Cout, H, W = 2, 4, 3, 16, 16
    key = jax.random.PRNGKey(0)
    kx, kw, kb = jax.random.split(key, 3)

    x = jax.random.normal(kx, (N, Cin, H, W), dtype=jnp.float32)
    weight = 0.1 * jax.random.normal(kw, (Cout, Cin, 1, 1), dtype=jnp.float32)
    bias = 0.05 * jax.random.normal(kb, (Cout,), dtype=jnp.float32)

    out = jax.block_until_ready(output_conv_forward(x, weight, bias))
    ref = output_conv_reference(x, weight, bias)
    assert out.shape == (N, Cout, H, W)
    assert jnp.allclose(out, ref, atol=1e-4, rtol=1e-4), "mismatch vs reference"

    # Second check with a spatial size that is NOT a multiple of 128 to
    # exercise the lane-padding path (H*W = 9*9 = 81 -> padded to 128).
    x2 = jax.random.normal(jax.random.PRNGKey(2), (N, Cin, 9, 9), dtype=jnp.float32)
    out2 = jax.block_until_ready(output_conv_forward(x2, weight, bias))
    ref2 = output_conv_reference(x2, weight, bias)
    assert jnp.allclose(out2, ref2, atol=1e-4, rtol=1e-4), "mismatch (padded HW)"

    print("KERNEL_OK")
</pallas_src>

<mosaic_0001>
module attributes {stable_mosaic.version = 11 : i64} {
  func.func @conv1x1_sigmoid_kernel(%arg0: i32, %arg1: i32, %arg2: memref<1x4x256xf32, #tpu.memory_space<vmem>>, %arg3: memref<3x4xf32, #tpu.memory_space<vmem>>, %arg4: memref<3x1xf32, #tpu.memory_space<vmem>>, %arg5: memref<1x3x256xf32, #tpu.memory_space<vmem>>) attributes {dimension_semantics = [#tpu.dimension_semantics<parallel>, #tpu.dimension_semantics<parallel>], iteration_bounds = array<i64: 2, 1>, scalar_prefetch = 0 : i64, scratch_operands = 0 : i64, tpu.core_type = #tpu.core_type<tc>, window_params = [{transform_indices = @transform_0, window_bounds = array<i64: 1, 4, 256>}, {pipeline_mode = #tpu.pipeline_mode<synchronous>, transform_indices = @transform_1, window_bounds = array<i64: 3, 4>}, {pipeline_mode = #tpu.pipeline_mode<synchronous>, transform_indices = @transform_2, window_bounds = array<i64: 3, 1>}, {transform_indices = @transform_3, window_bounds = array<i64: 1, 3, 256>}]} {
    %c0 = arith.constant 0 : index
    %c0_0 = arith.constant 0 : index
    %c0_1 = arith.constant 0 : index
    %0 = vector.load %arg2[%c0, %c0_0, %c0_1] : memref<1x4x256xf32, #tpu.memory_space<vmem>>, vector<1x4x256xf32>
    %1 = vector.shape_cast %0 : vector<1x4x256xf32> to vector<4x256xf32>
    %c0_2 = arith.constant 0 : index
    %c0_3 = arith.constant 0 : index
    %2 = vector.load %arg3[%c0_2, %c0_3] : memref<3x4xf32, #tpu.memory_space<vmem>>, vector<3x4xf32>
    %cst = arith.constant dense<0.000000e+00> : vector<3x256xf32>
    %3 = tpu.matmul %2, %1, %cst {dimension_numbers = #tpu.dot_dimension_numbers<[1], [0], [0], [1], [0, 0, 1, 1], [], []>} : vector<3x4xf32>, vector<4x256xf32>, vector<3x256xf32> -> vector<3x256xf32>
    %c0_4 = arith.constant 0 : index
    %c0_5 = arith.constant 0 : index
    %4 = vector.load %arg4[%c0_4, %c0_5] : memref<3x1xf32, #tpu.memory_space<vmem>>, vector<3x1xf32>
    %5 = vector.broadcast %4 : vector<3x1xf32> to vector<3x256xf32>
    %6 = arith.addf %3, %5 : vector<3x256xf32>
    %7 = arith.negf %6 : vector<3x256xf32>
    %8 = math.exp %7 : vector<3x256xf32>
    %cst_6 = arith.constant 1.000000e+00 : f32
    %9 = vector.broadcast %cst_6 : f32 to vector<3x256xf32>
    %10 = arith.addf %9, %8 : vector<3x256xf32>
    %11 = arith.divf %9, %10 : vector<3x256xf32>
    %c0_7 = arith.constant 0 : index
    %c0_8 = arith.constant 0 : index
    %c0_9 = arith.constant 0 : index
    %12 = vector.load %arg5[%c0_7, %c0_8, %c0_9] : memref<1x3x256xf32, #tpu.memory_space<vmem>>, vector<1x3x256xf32>
    %13 = vector.shape_cast %12 : vector<1x3x256xf32> to vector<3x256xf32>
    %14 = vector.shape_cast %11 : vector<3x256xf32> to vector<1x3x256xf32>
    tpu.vector_store %arg5[%c0_7, %c0_8, %c0_9], %14 {strides = array<i32>} : memref<1x3x256xf32, #tpu.memory_space<vmem>>, vector<1x3x256xf32>,
    return
  }
  func.func @transform_0(%arg0: i32, %arg1: i32) -> (i32, i32, i32) {
    %c0_i32 = arith.constant 0 : i32
    %c0_i32_0 = arith.constant 0 : i32
    return %arg0, %c0_i32, %arg1 : i32, i32, i32
  }
  func.func @transform_1(%arg0: i32, %arg1: i32) -> (i32, i32) {
    %c0_i32 = arith.constant 0 : i32
    %c0_i32_0 = arith.constant 0 : i32
    %c0_i32_1 = arith.constant 0 : i32
    return %c0_i32, %c0_i32_0 : i32, i32
  }
  func.func @transform_2(%arg0: i32, %arg1: i32) -> (i32, i32) {
    %c0_i32 = arith.constant 0 : i32
    %c0_i32_0 = arith.constant 0 : i32
    %c0_i32_1 = arith.constant 0 : i32
    return %c0_i32, %c0_i32_0 : i32, i32
  }
  func.func @transform_3(%arg0: i32, %arg1: i32) -> (i32, i32, i32) {
    %c0_i32 = arith.constant 0 : i32
    %c0_i32_0 = arith.constant 0 : i32
    return %arg0, %c0_i32, %arg1 : i32, i32, i32
  }
}

</mosaic_0001>

<bundles_post_ra>
// kernel: tpu_custom_call.1
= control target key start
LH: loop header
LB: loop body
LE: loop exit
PB: predicated region body
PF: predicated region fallthrough
CT: control target
= control target key end

     0   :  { %8 = vsyncpa [#allocation3], 0  ;;  %s715_s0 = inlined_call_operand.hbm [shape: f32[2,4,256], index: 0, kind: input, shape index: {}]   ;;  %s716_s1 = inlined_call_operand.vmem [shape: f32[3,4], index: 1, kind: input, shape index: {}]   ;;  %s717_s2 = inlined_call_operand.vmem [shape: f32[3,1], index: 2, kind: input, shape index: {}]   ;;  %s718_s3 = inlined_call_operand.vmem [shape: f32[2,3,256], index: 3, kind: output, shape index: {}]  }
   0x1   :  { %10 = vsyncpa [#allocation3 + $0x1], 0  ;;  %s609_s12 = smov 0   ;;  %s611_s13 = smov 0  }
   0x2   :  { %s613_s14 = smov 0   ;;  %s615_s15 = smov 0  }
   0x3   :  { %s617_s16 = smov 0   ;;  %s619_s17 = smov 0  }
   0x4 LB: > { %s419_s18 = sadd.s32 4294967295, %s584_s17   ;;  %s28_s19 = sadd.s32 1, %s580_s16  ;;  %s584_s17 = sphi %s619_s17, %s16_s17   ;;  %s580_s16 = sphi %s617_s16, %s726_s16   ;;  %s576_s15 = sphi %s615_s15, %s725_s15   ;;  %s572_s14 = sphi %s613_s14, %s724_s14   ;;  %s568_s13 = sphi %s611_s13, %s723_s13   ;;  %s564_s12 = sphi %s609_s12, %s722_s12  }
   0x5   : > { %p30_p0 = scmp.ge.s32.totalorder %s28_s19, 2  ;;  %s37_s20 = sadd.s32 1, %s572_s14 }
   0x6   : > { %p44_p1 = scmp.ne.s32.totalorder %s572_s14, %s568_s13  ;;  %p45_p2 = scmp.eq.s32.totalorder %s584_s17, 0 }
   0x7   : > { %s728_s19 = smov (%p30_p0, %s28_s19), 0  ;;  %p50_p4 = scmp.ne.s32.totalorder %s568_s13, %s564_s12 }
   0x8   : > { %p645_p3 = por %p45_p2, %p44_p1  ;;  %s32_s22 = ssub.s32 %s580_s16, %s728_s19 }
   0x9   : > { %p51_p5 = scmp.eq.s32.totalorder %s419_s18, 0  ;;  %p35_p6 = scmp.eq.s32.totalorder %s32_s22, 0 }
   0xa   : > { %p445_p8 = scmp.lt.s32.totalorder %s584_s17, 2  ;;  %s150_s25 = sand.u32 1, %s572_s14  }
   0xb   : > { %p652_p7 = por %p51_p5, %p50_p4  ;;  %s437_s26 = sshll.u32 %s580_s16, 7 }
   0xc   : > { %s658_s24 = scalar_select %p35_p6, %s572_s14, %s37_s20  }
   0xd   : > { %s423_s27 = sshll.u32 %s150_s25, 3  ;;  %s162_s30 = scalar_lea.hbm %s715_s0, %s437_s26 }
   0xe   : > { %s154_s4 = scalar_lea.vmem [#allocation2], %s423_s27  ;;  %p667_p9 = pnand %p445_p8, %p645_p3 }
   0xf   : > { %s164_s5 = sshll.u32 %s154_s4, 4  ;;  %p426_p10 = scmp.ge.s32.totalorder %s584_s17, 1  ;;  %s165_s5 = int_to_ptr.vmem [resolvable:$true] %s164_s5 }
  0x10   : > { %p169_p11 = scmp.lt.s32.totalorder %s584_s17, 3  ;;  %s151_s7 = scalar_lea.sflag [#allocation3], %s150_s25 }
  0x11   : > { %p508_p12 = pneg %p667_p9  ;;  %s519_s8 = scalar_lea.vmem %s165_s5, 128 }
  0x12   : > { %p520_p13 = scmp.ne.s32.totalorder %s165_s5, %s519_s8  ;;  %s586_s9 = smov [#allocation2]  }
  0x13   : > { %s524_s10 = sshll.u32 %s586_s9, 4  ;;  %s525_s10 = int_to_ptr.vmem [resolvable:$false] %s524_s10 }
  0x14   : > { %p522_p0 = pnand %p520_p13, %p508_p12  ;;  %s526_s11 = scalar_lea.vmem %s525_s10, 256 }
  0x15   : > { %p527_p2 = scmp.lt.s32.totalorder %s165_s5, %s525_s10  ;;  %p528_p3 = scmp.lt.s32.totalorder %s526_s11, %s519_s8 }
  0x16   : > { %p523_p1 = pneg %p522_p0 }
  0x17   : > { %p529_p4 = por %p528_p3, %p527_p2 }
  0x19   : > { %p530_p5 = pnand %p529_p4, %p523_p1 }
  0x1b   : > { %533 = shalt.err (!%p530_p5)
}
  0x1c   : > { %444 = dma.hbm_to_vmem [thread:$0]  (!%p667_p9), %s162_s30, 128, %s165_s5, %s151_s7  }
  0x1d   : > { %p170_p6 = pnand %p426_p10, %p169_p11 }
  0x1e   : > { %s175_s12 = sand.u32 (!%p170_p6), 1, %s568_s13  }
  0x1f   : > { %173 = sbr.rel (%p170_p6) target bundleno = 274 (0x112), region = 32  ;;  %s427_s18 = sshll.u32 (!%p170_p6), %s175_s12, 3 }
  0x20   : > { %s176_s20 = scalar_lea.sflag (!%p170_p6), [#allocation3], %s175_s12  ;;  %s179_s21 = scalar_lea.vmem (!%p170_p6), [#allocation2], %s427_s18 }
  0x24   : > { %559 = dma.done.wait (%p652_p7), %s176_s20, 128  }
  0x25   : > { %561 = vsyncadd (%p652_p7), %s176_s20, 4294967168  ;;  %v587_v0 = vmov 0.0   ;;  %v588_v1 = vmov 0   ;;  %v217_v2 = vld [vmem:[%s179_s21] sm:$0xff]  ;;  %vm231_vm0 = vcmask 1043456   ;;  %vm227_vm1 = vcmask 31744  }
  0x26   : > { %300 = vmatprep.mubr.f32.mxu0 %v587_v0  ;;  %496 = vset.pattern.permute.xlu0 %v588_v1  ;;  %v219_v3 = vld [vmem:[%s717_s2] sm:$0x7]  ;;  %v226_v4 = vcombine.high %v217_v2, %v217_v2  ;;  %p208_p7 = scmp.lt.s32.totalorder %s576_s15, 1 }
  0x27   : > { %222 = vperm.xlu0 %496, %v219_v3   ;;  %v218_v5 = vld [vmem:[%s716_s1] sm:$0x7] }
  0x28   : > { %430 = vmatprep.subr.msk.mxu0 %vm231_vm0, %v226_v4  ;;  %s730_s15 = smov (!%p208_p7, %s576_s15), 1 }
  0x29   : > { %431 = vmatpush1.msk.msra.mxu0 %vm231_vm0, %v217_v2  ;;  %s438_s23 = sshll.u32 %s730_s15, 3 }
  0x2a   : > { %432 = vmatmul.mubr.msk.f32.vlgmr.msra.gmra.mxu0 %vm227_vm1, %v218_v5  ;;  %s215_s30 = scalar_lea.vmem %s718_s3, %s438_s23 }
  0xa2   : > { %v223_v6 = vpop.permute.xlu0 %222 }
  0xea   : > { %v302_v7 = vpop.f32.mrf.mxu0 }
  0xeb   : > { %v303_v8 = vadd.f32 %v302_v7, %v223_v6 }
  0xec   : > { %v304_v9 = vpop.f32.mrf.mxu0 }
  0xed   : > { %v433_v10 = vmul.f32 -1.442695, %v303_v8  ;;  %v305_v11 = vadd.f32 %v304_v9, %v223_v6 }
  0xef   : > { %498 = vpow2.f32 %v433_v10  ;;  %v434_v12 = vmul.f32 -1.442695, %v305_v11 }
  0xf1   : > { %500 = vpow2.f32 %v434_v12 }
  0xfc   : > { %v499_v13 = vpop.eup %498 }
  0xfd   : > { %v313_v14 = vadd.f32 1.0, %v499_v13 }
  0xfe   : > { %v501_v15 = vpop.eup %500 }
  0xff   : > { %v314_v16 = vadd.f32 1.0, %v501_v15  ;;  %502 = vrcp.f32 %v313_v14 }
 0x101   : > { %504 = vrcp.f32 %v314_v16 }
 0x10c   : > { %v503_v17 = vpop.eup %502 }
 0x10e   : > { %v505_v18 = vpop.eup %504 }
 0x10f   : > { %v321_v19 = vcombine.low %v503_v17, %v505_v18 }
 0x111   : > { %323 = vst [vmem:[%s215_s30] sm:$0x77] %v321_v19 }
 0x112 PF: > { %s16_s17 = sadd.s32 1, %s584_s17   ;;  %s722_s12 = smov %s568_s13 }
 0x113   : > { %p13_p8 = scmp.ge.s32.totalorder %s16_s17, 4   ;;  %s723_s13 = smov %s572_s14 }
 0x114   : > { %s724_s14 = smov %s658_s24  ;;  %s725_s15 = smov %s580_s16 }
 0x115   : > { %s726_s16 = smov %s728_s19  ;;  %15 = sbr.rel (!%p13_p8) target bundleno = 4 (0x4), region = 72 }
 0x11a   :  { %354 = vsyncpa [#allocation3], 1 }
 0x11b   :  { %356 = vsyncpa [#allocation3 + $0x1], 1 }

</bundles_post_ra>
